<compile_context>
chip_gen: v6e
topology: v6e:2x2x1
jax: 0.10.0
libtpu: 0.0.40
codegen_flags: <defaults>
</compile_context>

<pallas_src>
import jax
import jax.numpy as jnp
from jax.experimental import pallas as pl
from jax.experimental.pallas import tpu as pltpu


def _bce_dice_kernel(preds_ref, targets_ref, bce_ref, inter_ref, union_ref):
    l = pl.program_id(2)

    x = preds_ref[...]      # (TR, TL) f32 logits
    y = targets_ref[...]    # (TR, TL) f32 targets

    # One shared transcendental stream: e = exp(-|x|) feeds both the stable
    # softplus term of BCE-with-logits and the exact sigmoid.  The divide is
    # a single approx EUP reciprocal (frees the Newton-refinement VALU/EUP
    # work; matters once v7x's 3.2 TB/s HBM stops hiding transcendentals).
    e = jnp.exp(-jnp.abs(x))
    bce_elem = jnp.maximum(x, 0.0) - x * y + jnp.log1p(e)    # stable BCEWithLogits
    p = jnp.where(x >= 0.0, 1.0, e) * pl.reciprocal(1.0 + e, approx=True)

    # Per-row partial sums.  The cross-lane reduce is 1 XLU op per 8 rows per
    # quantity and hides under the multi-MiB per-step DMA, so we keep the
    # plain jnp.sum rather than a (TR, 128) lane-partial scratch accumulator.
    bce_part = jnp.sum(bce_elem, axis=1, keepdims=True)      # (TR, 1)
    inter_part = jnp.sum(p * y, axis=1, keepdims=True)       # (TR, 1)
    union_part = jnp.sum(p + y, axis=1, keepdims=True)       # (TR, 1) psum+tsum folded

    # Output blocks stay resident in VMEM across the L (reduction) axis.
    @pl.when(l == 0)
    def _():
        bce_ref[...] = jnp.zeros_like(bce_ref)
        inter_ref[...] = jnp.zeros_like(inter_ref)
        union_ref[...] = jnp.zeros_like(union_ref)

    bce_ref[...] += bce_part
    inter_ref[...] += inter_part
    union_ref[...] += union_part


def _round_up(x, m):
    return ((x + m - 1) // m) * m


def _pick_tile(dim, preferred, quantum):
    """Largest multiple of `quantum` <= `preferred` that divides `dim`;
    falls back to the full dimension (always a legal block shape)."""
    t = (min(preferred, dim) // quantum) * quantum
    while t >= quantum:
        if dim % t == 0:
            return t
        t -= quantum
    return dim


def _vmem_limit_bytes():
    """Generation-aware scoped-VMEM limit: ~70% of physical VMEM, capped at
    64 MiB (v5e/v6e: 128 MiB -> 64 MiB; v7x: 64 MiB -> ~45 MiB)."""
    try:
        cap = int(pltpu.get_tpu_info().vmem_capacity_bytes)
    except Exception:
        cap = 64 * 1024 * 1024          # conservative (v7x-sized) fallback
    return min(int(cap * 0.70), 64 * 1024 * 1024)


def bce_with_dice_loss(preds, targets, alpha, smooth=1e-6):
    N, C, H, W = preds.shape
    R, L = N * C, H * W

    p2 = preds.reshape(R, L).astype(jnp.float32)
    t2 = targets.reshape(R, L).astype(jnp.float32)

    # Pad to the (8 sublane, 128 lane) tiling quanta.  Padding preds with a
    # huge negative logit and targets with 0 makes every padded element
    # contribute exactly 0 to all three sums (exp underflows to 0 => BCE
    # term 0, sigmoid 0), so no in-kernel mask is needed.  Padded *rows* are
    # sliced off before the dice mean.
    Rp, Lp = _round_up(R, 8), _round_up(L, 128)
    if (Rp, Lp) != (R, L):
        p2 = jnp.pad(p2, ((0, Rp - R), (0, Lp - L)), constant_values=-1e9)
        t2 = jnp.pad(t2, ((0, Rp - R), (0, Lp - L)), constant_values=0.0)

    # --- Tile sizing (generation-aware) ---------------------------------
    # VMEM model per grid step: 2 inputs x 2 pipeline buffers (16*TR*TL B)
    # plus ~7 live f32 elementwise intermediates of block shape inside the
    # kernel (~28*TR*TL B)  ->  ~44*TR*TL bytes must fit in ~90% of the
    # scoped limit.  This is why we don't blindly go to 12-16 MiB buffers:
    # the intermediates share the same VMEM budget.
    vmem_limit = _vmem_limit_bytes()
    budget = (9 * vmem_limit) // 10
    TL = _pick_tile(Lp, 4096, 128)
    tr_pref = max(8, min(512, (budget // (44 * TL)) // 8 * 8))
    TR = _pick_tile(Rp, tr_pref, 8)
    if TR < tr_pref:
        # Few rows (small N*C): spend the VMEM budget on a wider lane tile.
        tl_pref = max(128, min(32768, (budget // (44 * TR)) // 128 * 128))
        TL = _pick_tile(Lp, tl_pref, 128)

    n_rt, n_lt = Rp // TR, Lp // TL
    # v7x megacore: ensure a "parallel" axis has >= 2 tiles.  First try
    # halving the R tile; if R is already one minimal tile, split the L
    # range into two parallel halves (partials combined in the wrapper).
    while n_rt < 2 and TR % 16 == 0:
        TR //= 2
        n_rt = Rp // TR
    n_sp = 2 if (n_rt < 2 and n_lt >= 2 and n_lt % 2 == 0) else 1
    n_lp = n_lt // n_sp

    out_sds = jax.ShapeDtypeStruct((n_sp, Rp, 1), jnp.float32)
    out_spec = pl.BlockSpec((None, TR, 1), lambda r, s, l: (s, r, 0))

    bce_out, inter_out, union_out = pl.pallas_call(
        _bce_dice_kernel,
        out_shape=(out_sds, out_sds, out_sds),
        grid=(n_rt, n_sp, n_lp),
        in_specs=[
            pl.BlockSpec((TR, TL), lambda r, s, l: (r, s * n_lp + l)),
            pl.BlockSpec((TR, TL), lambda r, s, l: (r, s * n_lp + l)),
        ],
        out_specs=(out_spec, out_spec, out_spec),
        compiler_params=pltpu.CompilerParams(
            dimension_semantics=("parallel", "parallel", "arbitrary"),
            vmem_limit_bytes=vmem_limit,
        ),
    )(p2, t2)

    # Scalar glue (matches the PyTorch module's final combine).  Padded rows
    # / lanes contributed exactly 0, so only the dice mean needs the [:R]
    # slice.
    bce_loss = jnp.sum(bce_out) / jnp.float32(R * L)
    inter = jnp.sum(inter_out[:, :R, 0], axis=0)     # (R,)
    union = jnp.sum(union_out[:, :R, 0], axis=0)     # (R,)
    dice = (2.0 * inter + smooth) / (union + smooth)
    dice_loss = 1.0 - jnp.mean(dice)
    return alpha * bce_loss + (1.0 - alpha) * dice_loss


def _reference(preds, targets, alpha, smooth=1e-6):
    """Pure-JAX reference mirroring the PyTorch forward."""
    x = preds.astype(jnp.float32)
    y = targets.astype(jnp.float32)
    bce = jnp.mean(jnp.maximum(x, 0.0) - x * y + jnp.log1p(jnp.exp(-jnp.abs(x))))
    p = jax.nn.sigmoid(x)
    inter = jnp.sum(p * y, axis=(2, 3))
    union = jnp.sum(p, axis=(2, 3)) + jnp.sum(y, axis=(2, 3))
    dice = (2.0 * inter + smooth) / (union + smooth)
    dice_loss = 1.0 - jnp.mean(dice)
    return alpha * bce + (1.0 - alpha) * dice_loss


if __name__ == "__main__":
    # BCEWithDiceLoss(alpha) has no learnable weights; alpha/smooth are the
    # only "parameters" and are set deterministically here.
    alpha = 0.7
    smooth = 1e-6

    key = jax.random.PRNGKey(0)
    k1, k2 = jax.random.split(key)
    N, C, H, W = 2, 4, 16, 16
    preds = jax.random.normal(k1, (N, C, H, W), dtype=jnp.float32)           # logits
    targets = (jax.random.uniform(k2, (N, C, H, W)) > 0.5).astype(jnp.float32)

    fn = jax.jit(lambda p, t: bce_with_dice_loss(p, t, alpha, smooth))
    loss = jax.block_until_ready(fn(preds, targets))

    ref = _reference(preds, targets, alpha, smooth)
    # Tolerance 2e-3: the only approximation vs. the reference is the
    # approx-EUP reciprocal inside the sigmoid (<~1e-3 relative on dice).
    assert jnp.allclose(loss, ref, rtol=2e-3, atol=2e-3), (loss, ref)

    print("KERNEL_OK")
</pallas_src>

<mosaic_0001>
module attributes {stable_mosaic.version = 11 : i64} {
  func.func @_bce_dice_kernel(%arg0: i32, %arg1: i32, %arg2: i32, %arg3: memref<8x256xf32, #tpu.memory_space<vmem>>, %arg4: memref<8x256xf32, #tpu.memory_space<vmem>>, %arg5: memref<1x8x1xf32, #tpu.memory_space<vmem>>, %arg6: memref<1x8x1xf32, #tpu.memory_space<vmem>>, %arg7: memref<1x8x1xf32, #tpu.memory_space<vmem>>) attributes {dimension_semantics = [#tpu.dimension_semantics<parallel>, #tpu.dimension_semantics<parallel>, #tpu.dimension_semantics<arbitrary>], iteration_bounds = array<i64: 1, 1, 1>, scalar_prefetch = 0 : i64, scratch_operands = 0 : i64, tpu.core_type = #tpu.core_type<tc>, window_params = [{transform_indices = @transform_0, window_bounds = array<i64: 8, 256>}, {transform_indices = @transform_1, window_bounds = array<i64: 8, 256>}, {transform_indices = @transform_2, window_bounds = array<i64: 1, 8, 1>}, {transform_indices = @transform_3, window_bounds = array<i64: 1, 8, 1>}, {transform_indices = @transform_4, window_bounds = array<i64: 1, 8, 1>}]} {
    %c0 = arith.constant 0 : index
    %c0_0 = arith.constant 0 : index
    %0 = vector.load %arg3[%c0, %c0_0] : memref<8x256xf32, #tpu.memory_space<vmem>>, vector<8x256xf32>
    %c0_1 = arith.constant 0 : index
    %c0_2 = arith.constant 0 : index
    %1 = vector.load %arg4[%c0_1, %c0_2] : memref<8x256xf32, #tpu.memory_space<vmem>>, vector<8x256xf32>
    %2 = math.absf %0 : vector<8x256xf32>
    %cst = arith.constant 0.000000e+00 : f32
    %3 = vector.broadcast %cst : f32 to vector<8x256xf32>
    %4 = arith.subf %3, %2 : vector<8x256xf32>
    %5 = math.exp %4 : vector<8x256xf32>
    %cst_3 = arith.constant 0.000000e+00 : f32
    %6 = vector.broadcast %cst_3 : f32 to vector<8x256xf32>
    %7 = arith.maximumf %0, %6 : vector<8x256xf32>
    %8 = arith.mulf %0, %1 : vector<8x256xf32>
    %9 = arith.subf %7, %8 : vector<8x256xf32>
    %10 = math.log1p %5 : vector<8x256xf32>
    %11 = arith.addf %9, %10 : vector<8x256xf32>
    %cst_4 = arith.constant 0.000000e+00 : f32
    %12 = vector.broadcast %cst_4 : f32 to vector<8x256xf32>
    %13 = arith.cmpf oge, %0, %12 : vector<8x256xf32>
    %cst_5 = arith.constant 1.000000e+00 : f32
    %14 = vector.broadcast %cst_5 : f32 to vector<8x256xf32>
    %15 = arith.select %13, %14, %5 : vector<8x256xi1>, vector<8x256xf32>
    %cst_6 = arith.constant 1.000000e+00 : f32
    %16 = vector.broadcast %cst_6 : f32 to vector<8x256xf32>
    %17 = arith.addf %16, %5 : vector<8x256xf32>
    %18 = tpu.reciprocal %17 {approx = true} : vector<8x256xf32> -> vector<8x256xf32>
    %19 = arith.mulf %15, %18 : vector<8x256xf32>
    %cst_7 = arith.constant dense<0.000000e+00> : vector<8xf32>
    %20 = vector.multi_reduction <add>, %11, %cst_7 [1] : vector<8x256xf32> to vector<8xf32>
    %21 = vector.shape_cast %20 : vector<8xf32> to vector<8x1xf32>
    %22 = arith.mulf %19, %1 : vector<8x256xf32>
    %cst_8 = arith.constant dense<0.000000e+00> : vector<8xf32>
    %23 = vector.multi_reduction <add>, %22, %cst_8 [1] : vector<8x256xf32> to vector<8xf32>
    %24 = vector.shape_cast %23 : vector<8xf32> to vector<8x1xf32>
    %25 = arith.addf %19, %1 : vector<8x256xf32>
    %cst_9 = arith.constant dense<0.000000e+00> : vector<8xf32>
    %26 = vector.multi_reduction <add>, %25, %cst_9 [1] : vector<8x256xf32> to vector<8xf32>
    %27 = vector.shape_cast %26 : vector<8xf32> to vector<8x1xf32>
    %c0_i32 = arith.constant 0 : i32
    %28 = arith.cmpi eq, %arg2, %c0_i32 : i32
    %29 = arith.extui %28 : i1 to i32
    %c0_i32_10 = arith.constant 0 : i32
    %30 = arith.cmpi ne, %29, %c0_i32_10 : i32
    scf.if %30 {
      %cst_29 = arith.constant 0.000000e+00 : f32
      %49 = vector.broadcast %cst_29 : f32 to vector<8x1xf32>
      %c0_30 = arith.constant 0 : index
      %c0_31 = arith.constant 0 : index
      %c0_32 = arith.constant 0 : index
      %50 = vector.load %arg5[%c0_30, %c0_31, %c0_32] : memref<1x8x1xf32, #tpu.memory_space<vmem>>, vector<1x8x1xf32>
      %51 = vector.shape_cast %50 : vector<1x8x1xf32> to vector<8x1xf32>
      %52 = vector.shape_cast %49 : vector<8x1xf32> to vector<1x8x1xf32>
      tpu.vector_store %arg5[%c0_30, %c0_31, %c0_32], %52 {strides = array<i32>} : memref<1x8x1xf32, #tpu.memory_space<vmem>>, vector<1x8x1xf32>,
      %cst_33 = arith.constant 0.000000e+00 : f32
      %53 = vector.broadcast %cst_33 : f32 to vector<8x1xf32>
      %c0_34 = arith.constant 0 : index
      %c0_35 = arith.constant 0 : index
      %c0_36 = arith.constant 0 : index
      %54 = vector.load %arg6[%c0_34, %c0_35, %c0_36] : memref<1x8x1xf32, #tpu.memory_space<vmem>>, vector<1x8x1xf32>
      %55 = vector.shape_cast %54 : vector<1x8x1xf32> to vector<8x1xf32>
      %56 = vector.shape_cast %53 : vector<8x1xf32> to vector<1x8x1xf32>
      tpu.vector_store %arg6[%c0_34, %c0_35, %c0_36], %56 {strides = array<i32>} : memref<1x8x1xf32, #tpu.memory_space<vmem>>, vector<1x8x1xf32>,
      %cst_37 = arith.constant 0.000000e+00 : f32
      %57 = vector.broadcast %cst_37 : f32 to vector<8x1xf32>
      %c0_38 = arith.constant 0 : index
      %c0_39 = arith.constant 0 : index
      %c0_40 = arith.constant 0 : index
      %58 = vector.load %arg7[%c0_38, %c0_39, %c0_40] : memref<1x8x1xf32, #tpu.memory_space<vmem>>, vector<1x8x1xf32>
      %59 = vector.shape_cast %58 : vector<1x8x1xf32> to vector<8x1xf32>
      %60 = vector.shape_cast %57 : vector<8x1xf32> to vector<1x8x1xf32>
      tpu.vector_store %arg7[%c0_38, %c0_39, %c0_40], %60 {strides = array<i32>} : memref<1x8x1xf32, #tpu.memory_space<vmem>>, vector<1x8x1xf32>,
    } else {
    }
    %c0_11 = arith.constant 0 : index
    %c0_12 = arith.constant 0 : index
    %c0_13 = arith.constant 0 : index
    %31 = vector.load %arg5[%c0_11, %c0_12, %c0_13] : memref<1x8x1xf32, #tpu.memory_space<vmem>>, vector<1x8x1xf32>
    %32 = vector.shape_cast %31 : vector<1x8x1xf32> to vector<8x1xf32>
    %33 = arith.addf %32, %21 : vector<8x1xf32>
    %c0_14 = arith.constant 0 : index
    %c0_15 = arith.constant 0 : index
    %c0_16 = arith.constant 0 : index
    %34 = vector.load %arg5[%c0_14, %c0_15, %c0_16] : memref<1x8x1xf32, #tpu.memory_space<vmem>>, vector<1x8x1xf32>
    %35 = vector.shape_cast %34 : vector<1x8x1xf32> to vector<8x1xf32>
    %36 = vector.shape_cast %33 : vector<8x1xf32> to vector<1x8x1xf32>
    tpu.vector_store %arg5[%c0_14, %c0_15, %c0_16], %36 {strides = array<i32>} : memref<1x8x1xf32, #tpu.memory_space<vmem>>, vector<1x8x1xf32>,
    %c0_17 = arith.constant 0 : index
    %c0_18 = arith.constant 0 : index
    %c0_19 = arith.constant 0 : index
    %37 = vector.load %arg6[%c0_17, %c0_18, %c0_19] : memref<1x8x1xf32, #tpu.memory_space<vmem>>, vector<1x8x1xf32>
    %38 = vector.shape_cast %37 : vector<1x8x1xf32> to vector<8x1xf32>
    %39 = arith.addf %38, %24 : vector<8x1xf32>
    %c0_20 = arith.constant 0 : index
    %c0_21 = arith.constant 0 : index
    %c0_22 = arith.constant 0 : index
    %40 = vector.load %arg6[%c0_20, %c0_21, %c0_22] : memref<1x8x1xf32, #tpu.memory_space<vmem>>, vector<1x8x1xf32>
    %41 = vector.shape_cast %40 : vector<1x8x1xf32> to vector<8x1xf32>
    %42 = vector.shape_cast %39 : vector<8x1xf32> to vector<1x8x1xf32>
    tpu.vector_store %arg6[%c0_20, %c0_21, %c0_22], %42 {strides = array<i32>} : memref<1x8x1xf32, #tpu.memory_space<vmem>>, vector<1x8x1xf32>,
    %c0_23 = arith.constant 0 : index
    %c0_24 = arith.constant 0 : index
    %c0_25 = arith.constant 0 : index
    %43 = vector.load %arg7[%c0_23, %c0_24, %c0_25] : memref<1x8x1xf32, #tpu.memory_space<vmem>>, vector<1x8x1xf32>
    %44 = vector.shape_cast %43 : vector<1x8x1xf32> to vector<8x1xf32>
    %45 = arith.addf %44, %27 : vector<8x1xf32>
    %c0_26 = arith.constant 0 : index
    %c0_27 = arith.constant 0 : index
    %c0_28 = arith.constant 0 : index
    %46 = vector.load %arg7[%c0_26, %c0_27, %c0_28] : memref<1x8x1xf32, #tpu.memory_space<vmem>>, vector<1x8x1xf32>
    %47 = vector.shape_cast %46 : vector<1x8x1xf32> to vector<8x1xf32>
    %48 = vector.shape_cast %45 : vector<8x1xf32> to vector<1x8x1xf32>
    tpu.vector_store %arg7[%c0_26, %c0_27, %c0_28], %48 {strides = array<i32>} : memref<1x8x1xf32, #tpu.memory_space<vmem>>, vector<1x8x1xf32>,
    return
  }
  func.func @transform_0(%arg0: i32, %arg1: i32, %arg2: i32) -> (i32, i32) {
    %c1_i32 = arith.constant 1 : i32
    %0 = arith.muli %arg1, %c1_i32 : i32
    %1 = arith.addi %0, %arg2 : i32
    %c0_i32 = arith.constant 0 : i32
    return %arg0, %1 : i32, i32
  }
  func.func @transform_1(%arg0: i32, %arg1: i32, %arg2: i32) -> (i32, i32) {
    %c1_i32 = arith.constant 1 : i32
    %0 = arith.muli %arg1, %c1_i32 : i32
    %1 = arith.addi %0, %arg2 : i32
    %c0_i32 = arith.constant 0 : i32
    return %arg0, %1 : i32, i32
  }
  func.func @transform_2(%arg0: i32, %arg1: i32, %arg2: i32) -> (i32, i32, i32) {
    %c0_i32 = arith.constant 0 : i32
    %c0_i32_0 = arith.constant 0 : i32
    return %arg1, %arg0, %c0_i32 : i32, i32, i32
  }
  func.func @transform_3(%arg0: i32, %arg1: i32, %arg2: i32) -> (i32, i32, i32) {
    %c0_i32 = arith.constant 0 : i32
    %c0_i32_0 = arith.constant 0 : i32
    return %arg1, %arg0, %c0_i32 : i32, i32, i32
  }
  func.func @transform_4(%arg0: i32, %arg1: i32, %arg2: i32) -> (i32, i32, i32) {
    %c0_i32 = arith.constant 0 : i32
    %c0_i32_0 = arith.constant 0 : i32
    return %arg1, %arg0, %c0_i32 : i32, i32, i32
  }
}

</mosaic_0001>

<bundles_post_ra>
// kernel: _lambda_.1
= control target key start
LH: loop header
LB: loop body
LE: loop exit
PB: predicated region body
PF: predicated region fallthrough
CT: control target
= control target key end

     0   :  { %vm123_vm0 = vcmask 7168   ;;  %v174_v2 = vmov 0.0   ;;  %s248_s0 = inlined_call_operand.vmem [shape: f32[8,256], index: 0, kind: input, shape index: {}]   ;;  %s249_s2 = inlined_call_operand.vmem [shape: f32[1,8,1], index: 2, kind: output, shape index: {0}]   ;;  %s250_s1 = inlined_call_operand.vmem [shape: f32[8,256], index: 1, kind: input, shape index: {}]   ;;  %s251_s4 = inlined_call_operand.vmem [shape: f32[1,8,1], index: 4, kind: output, shape index: {2}]   ;;  %s252_s3 = inlined_call_operand.vmem [shape: f32[1,8,1], index: 3, kind: output, shape index: {1}]  }
   0x1   :  { %v58_v0 = vld [vmem:[%s248_s0] sm:$0xff]  ;;  %v59_v1 = vld [vmem:[%s248_s0 + $0x8] sm:$0xff]  ;;  %124 = vst.msk [vmem:[%s249_s2] sm:$0xff] %vm123_vm0, %v174_v2  ;;  %126 = vst.msk [vmem:[%s251_s4] sm:$0xff] %vm123_vm0, %v174_v2 }
   0x2   :  { %v62_v3 = vand.u32 2147483647, %v58_v0  ;;  %v63_v4 = vand.u32 2147483647, %v59_v1  ;;  %v60_v15 = vld [vmem:[%s250_s1] sm:$0xff]  ;;  %v61_v16 = vld [vmem:[%s250_s1 + $0x8] sm:$0xff] }
   0x3   :  { %v70_v18 = vmax.f32 %v58_v0, 0.0  ;;  %v72_v19 = vmul.f32 %v60_v15, %v58_v0  ;;  %v71_v22 = vmax.f32 %v59_v1, 0.0  ;;  %v73_v23 = vmul.f32 %v61_v16, %v59_v1  ;;  %125 = vst.msk [vmem:[%s252_s3] sm:$0xff] %vm123_vm0, %v174_v2 }
   0x4   :  { %v64_v5 = vsub.f32 0.0, %v62_v3  ;;  %v65_v6 = vsub.f32 0.0, %v63_v4  ;;  %vm96_vm1 = vcmp.ge.f32.partialorder %v58_v0, 0.0  ;;  %vm97_vm2 = vcmp.ge.f32.partialorder %v59_v1, 0.0 }
   0x5   :  { %v74_v27 = vsub.f32 %v70_v18, %v72_v19  ;;  %v75_v31 = vsub.f32 %v71_v22, %v73_v23 }
   0x6   :  { %v66_v7 = vmul.f32 1.442695, %v64_v5  ;;  %v68_v8 = vmul.f32 1.442695, %v65_v6 }
   0x8   :  { %162 = vpow2.f32 %v66_v7  ;;  %v127_v50 = vld [vmem:[%s249_s2] sm:$0xff] }
   0x9   :  { %164 = vpow2.f32 %v68_v8  ;;  %v134_v51 = vld [vmem:[%s251_s4] sm:$0xff] }
   0xa   :  { %v131_v56 = vld [vmem:[%s252_s3] sm:$0xff] }
  0x15   :  { %v163_v9 = vpop.eup %162 }
  0x16   :  { %v165_v10 = vpop.eup %164  ;;  %v76_v11 = vadd.f32 1.0, %v163_v9  ;;  %v79_v13 = vmul.f32 -0.5, %v163_v9  ;;  %v82_v20 = vand.u32 2147483647, %v163_v9  ;;  %v98_v29 = vsel %vm96_vm1, 1.0, %v163_v9 }
  0x17   :  { %v85_v12 = vadd.f32 1.0, %v165_v10  ;;  %v88_v14 = vmul.f32 -0.5, %v165_v10  ;;  %v91_v24 = vand.u32 2147483647, %v165_v10  ;;  %v99_v33 = vsel %vm97_vm2, 1.0, %v165_v10 }
  0x18   :  { %166 = vlog2.f32 %v76_v11  ;;  %v80_v17 = vadd.f32 1.0, %v79_v13  ;;  %vm83_vm3 = vcmp.lt.f32.partialorder %v82_v20, 0.0004427343 }
  0x19   :  { %168 = vlog2.f32 %v85_v12  ;;  %v89_v21 = vadd.f32 1.0, %v88_v14  ;;  %vm92_vm4 = vcmp.lt.f32.partialorder %v91_v24, 0.0004427343 }
  0x1a   :  { %170 = vrcp.f32 %v76_v11  ;;  %v81_v25 = vmul.f32 %v163_v9, %v80_v17 }
  0x1b   :  { %172 = vrcp.f32 %v85_v12  ;;  %v90_v28 = vmul.f32 %v165_v10, %v89_v21 }
  0x25   :  { %v167_v26 = vpop.eup %166 }
  0x26   :  { %v169_v30 = vpop.eup %168  ;;  %v78_v32 = vmul.f32 0.6931472, %v167_v26 }
  0x27   :  { %v171_v34 = vpop.eup %170  ;;  %v87_v35 = vmul.f32 0.6931472, %v169_v30 }
  0x28   :  { %v173_v36 = vpop.eup %172  ;;  %v84_v37 = vsel %vm83_vm3, %v81_v25, %v78_v32  ;;  %v104_v38 = vmul.f32 %v171_v34, %v98_v29 }
  0x29   :  { %v93_v39 = vsel %vm92_vm4, %v90_v28, %v87_v35  ;;  %v94_v40 = vadd.f32 %v84_v37, %v74_v27  ;;  %v105_v41 = vmul.f32 %v173_v36, %v99_v33 }
  0x2a   :  { %v95_v42 = vadd.f32 %v93_v39, %v75_v31  ;;  %v114_v43 = vadd.f32 %v104_v38, %v60_v15  ;;  %v109_v44 = vmul.f32 %v104_v38, %v60_v15 }
  0x2b   :  { %v115_v45 = vadd.f32 %v105_v41, %v61_v16  ;;  %v110_v46 = vmul.f32 %v105_v41, %v61_v16 }
  0x2c   :  { %v106_v47 = vadd.f32 %v95_v42, %v94_v40 }
  0x2d   :  { %v116_v48 = vadd.f32 %v115_v45, %v114_v43  ;;  %v111_v49 = vadd.f32 %v110_v46, %v109_v44 }
  0x2e   :  { %107 = vadd.xlane.f32.xlu0 %v106_v47 }
  0x2f   :  { %117 = vadd.xlane.f32.xlu1 %v116_v48 }
  0x32   :  { %112 = vadd.xlane.f32.xlu0 %v111_v49 }
  0xb7   :  { %v108_v52 = vpop.xlane.xlu0 %107 }
  0xb8   :  { %v128_v53 = vadd.f32 %v127_v50, %v108_v52  ;;  %v118_v54 = vpop.xlane.xlu1 %117 }
  0xb9   :  { %v135_v55 = vadd.f32 %v134_v51, %v118_v54 }
  0xba   :  { %130 = vst.msk [vmem:[%s249_s2] sm:$0xff] %vm123_vm0, %v128_v53 }
  0xbb   :  { %136 = vst.msk [vmem:[%s251_s4] sm:$0xff] %vm123_vm0, %v135_v55  ;;  %v113_v57 = vpop.xlane.xlu0 %112 }
  0xbc   :  { %v132_v58 = vadd.f32 %v131_v56, %v113_v57 }
  0xbe   :  { %133 = vst.msk [vmem:[%s252_s3] sm:$0xff] %vm123_vm0, %v132_v58 }

</bundles_post_ra>
